<compile_context>
chip_gen: v7x
topology: tpu7x:2x2x1
jax: 0.10.0
libtpu: 0.0.40
codegen_flags: <defaults>
</compile_context>

<pallas_src>
import functools

import jax
import jax.numpy as jnp
from jax.experimental import pallas as pl
from jax.experimental.pallas import tpu as pltpu

NEGATIVE_SLOPE = 0.2


def _fused_conv_leaky_kernel(x_ref, w_ref, b_ref, o_ref, *, negative_slope):
    # x_ref: (Cin, tm)      pixels on lanes, channels on sublanes (batch squeezed)
    # w_ref: (2*Cout, Cin)  fused 1x1 conv weights (conv1 ++ conv2)
    # b_ref: (2*Cout, 1)    fused biases
    # o_ref: (2*Cout, tm)   lane-dense output tile
    x = x_ref[...]
    w = w_ref[...]
    cin = x.shape[0]
    # K=3, Cout=16 would waste a full MXU tile; 3 VPU multiply-adds instead.
    acc = w[:, 0:1] * x[0:1, :]
    for k in range(1, cin):
        acc = acc + w[:, k:k + 1] * x[k:k + 1, :]
    y = acc + b_ref[...]
    o_ref[...] = jnp.where(y > 2.0, y, y * negative_slope)


def _choose_tm(m, tm_max=32768):
    """Lane-aligned tile (multiple of 128), capped so the double-buffered
    (3 in + 16 out) f32 tiles stay ~5 MB (fits all scoped-VMEM defaults)."""
    return min(pl.cdiv(m, 128) * 128, tm_max)


@functools.partial(jax.jit, static_argnames=("negative_slope", "tm"))
def model_forward(x, w1, b1, w2, b2, negative_slope=NEGATIVE_SLOPE, tm=None):
    """Pallas implementation of the valid part of Model.forward.

    x : (N, 3, H, W) float32 (NCHW, like the PyTorch reference)
    w1, w2 : (Cout, Cin) = (8, 3)   (1x1 conv kernels, squeezed)
    b1, b2 : (Cout,) = (8,)
    returns v9 : (N, 16, H+2, W+2) float32 (NCHW)
    """
    N, Cin, H, W = x.shape
    Cout = w1.shape[0]
    Cout2 = 2 * Cout
    Hp, Wp = H + 2, W + 2
    Mi = Hp * Wp

    # Fuse both convolutions into one weight/bias (removes in-kernel concat,
    # halves matmul + where work).
    w_cat = jnp.concatenate([w1, w2], axis=0)                    # (16, 3)
    b_cat = jnp.concatenate([b1, b2], axis=0).reshape(Cout2, 1)  # (16, 1)

    # Spatial zero padding: zero border pixels through the 1x1 conv give
    # exactly bias -> leaky(bias), identical to Conv2d(padding=1).
    xp = jnp.pad(x, ((0, 0), (0, 0), (1, 1), (1, 1))).reshape(N, Cin, Mi)

    if tm is None:
        tm = _choose_tm(Mi)
    Mpad = pl.cdiv(Mi, tm) * tm
    if Mpad != Mi:
        xp = jnp.pad(xp, ((0, 0), (0, 0), (0, Mpad - Mi)))

    kernel = functools.partial(_fused_conv_leaky_kernel,
                               negative_slope=negative_slope)

    cost = pl.CostEstimate(
        flops=2 * Cout2 * Cin * N * Mpad,
        transcendentals=0,
        bytes_accessed=(Cin + Cout2) * N * Mpad * 4,
    )

    out = pl.pallas_call(
        kernel,
        out_shape=jax.ShapeDtypeStruct((N, Cout2, Mpad), jnp.float32),
        grid_spec=pltpu.PrefetchScalarGridSpec(
            num_scalar_prefetch=0,
            grid=(N, Mpad // tm),
            in_specs=[
                pl.BlockSpec((None, Cin, tm), lambda n, i: (n, 0, i)),
                pl.BlockSpec((Cout2, Cin), lambda n, i: (0, 0)),
                pl.BlockSpec((Cout2, 1), lambda n, i: (0, 0)),
            ],
            out_specs=pl.BlockSpec((None, Cout2, tm), lambda n, i: (n, 0, i)),
        ),
        compiler_params=pltpu.CompilerParams(
            dimension_semantics=("parallel", "parallel")),
        cost_estimate=cost,
    )(xp, w_cat, b_cat)

    # Drop lane padding and restore NCHW; no transposes needed (batch/channel
    # order was preserved through the kernel).
    v9 = out[:, :, :Mi].reshape(N, Cout2, Hp, Wp)
    return v9


def _ref_forward(x, w1, b1, w2, b2, negative_slope=NEGATIVE_SLOPE):
    """Pure-JAX reference for correctness check (same valid subgraph)."""
    xp = jnp.pad(x, ((0, 0), (0, 0), (1, 1), (1, 1)))
    xh = jnp.transpose(xp, (0, 2, 3, 1))  # NHWC
    y1 = jnp.einsum("nhwc,oc->nhwo", xh, w1) + b1
    y1 = jnp.where(y1 > 2.0, y1, y1 * negative_slope)
    y2 = jnp.einsum("nhwc,oc->nhwo", xh, w2) + b2
    y2 = jnp.where(y2 > 2.0, y2, y2 * negative_slope)
    y = jnp.concatenate([y1, y2], axis=-1)
    return jnp.transpose(y, (0, 3, 1, 2))


if __name__ == "__main__":
    key = jax.random.PRNGKey(0)
    kx, kw1, kb1, kw2, kb2 = jax.random.split(key, 5)

    # Small shapes consistent with the module: N=2, C=3, H=W=16.
    x = jax.random.normal(kx, (2, 3, 16, 16), dtype=jnp.float32)

    # Deterministic init mimicking PyTorch Conv2d default (uniform, 1/sqrt(fan_in)).
    fan_in = 3 * 1 * 1
    bound = 1.0 / jnp.sqrt(fan_in)
    w1 = jax.random.uniform(kw1, (8, 3), jnp.float32, -bound, bound)
    b1 = jax.random.uniform(kb1, (8,), jnp.float32, -bound, bound)
    w2 = jax.random.uniform(kw2, (8, 3), jnp.float32, -bound, bound)
    b2 = jax.random.uniform(kb2, (8,), jnp.float32, -bound, bound)

    out = model_forward(x, w1, b1, w2, b2)
    out = jax.block_until_ready(out)

    ref = _ref_forward(x, w1, b1, w2, b2)
    assert out.shape == (2, 16, 18, 18), out.shape
    assert jnp.allclose(out, ref, atol=1e-5, rtol=1e-5), float(
        jnp.max(jnp.abs(out - ref)))

    print("KERNEL_OK")
</pallas_src>

<mosaic_0001>
module attributes {stable_mosaic.version = 11 : i64} {
  func.func @_fused_conv_leaky_kernel(%arg0: i32, %arg1: i32, %arg2: memref<1x3x384xf32, #tpu.memory_space<vmem>>, %arg3: memref<16x3xf32, #tpu.memory_space<vmem>>, %arg4: memref<16x1xf32, #tpu.memory_space<vmem>>, %arg5: memref<1x16x384xf32, #tpu.memory_space<vmem>>) attributes {dimension_semantics = [#tpu.dimension_semantics<parallel>, #tpu.dimension_semantics<parallel>], iteration_bounds = array<i64: 2, 1>, scalar_prefetch = 0 : i64, scratch_operands = 0 : i64, tpu.core_type = #tpu.core_type<tc>, window_params = [{transform_indices = @transform_0, window_bounds = array<i64: 1, 3, 384>}, {pipeline_mode = #tpu.pipeline_mode<synchronous>, transform_indices = @transform_1, window_bounds = array<i64: 16, 3>}, {pipeline_mode = #tpu.pipeline_mode<synchronous>, transform_indices = @transform_2, window_bounds = array<i64: 16, 1>}, {transform_indices = @transform_3, window_bounds = array<i64: 1, 16, 384>}]} {
    %c0 = arith.constant 0 : index
    %c0_0 = arith.constant 0 : index
    %c0_1 = arith.constant 0 : index
    %0 = vector.load %arg2[%c0, %c0_0, %c0_1] : memref<1x3x384xf32, #tpu.memory_space<vmem>>, vector<1x3x384xf32>
    %1 = vector.shape_cast %0 : vector<1x3x384xf32> to vector<3x384xf32>
    %c0_2 = arith.constant 0 : index
    %c0_3 = arith.constant 0 : index
    %2 = vector.load %arg3[%c0_2, %c0_3] : memref<16x3xf32, #tpu.memory_space<vmem>>, vector<16x3xf32>
    %3 = vector.extract_strided_slice %2 {offsets = [0, 0], sizes = [16, 1], strides = [1, 1]} : vector<16x3xf32> to vector<16x1xf32>
    %4 = vector.extract_strided_slice %1 {offsets = [0, 0], sizes = [1, 384], strides = [1, 1]} : vector<3x384xf32> to vector<1x384xf32>
    %5 = vector.broadcast %3 : vector<16x1xf32> to vector<16x384xf32>
    %6 = vector.broadcast %4 : vector<1x384xf32> to vector<16x384xf32>
    %7 = arith.mulf %5, %6 : vector<16x384xf32>
    %8 = vector.extract_strided_slice %2 {offsets = [0, 1], sizes = [16, 1], strides = [1, 1]} : vector<16x3xf32> to vector<16x1xf32>
    %9 = vector.extract_strided_slice %1 {offsets = [1, 0], sizes = [1, 384], strides = [1, 1]} : vector<3x384xf32> to vector<1x384xf32>
    %10 = vector.broadcast %8 : vector<16x1xf32> to vector<16x384xf32>
    %11 = vector.broadcast %9 : vector<1x384xf32> to vector<16x384xf32>
    %12 = arith.mulf %10, %11 : vector<16x384xf32>
    %13 = arith.addf %7, %12 : vector<16x384xf32>
    %14 = vector.extract_strided_slice %2 {offsets = [0, 2], sizes = [16, 1], strides = [1, 1]} : vector<16x3xf32> to vector<16x1xf32>
    %15 = vector.extract_strided_slice %1 {offsets = [2, 0], sizes = [1, 384], strides = [1, 1]} : vector<3x384xf32> to vector<1x384xf32>
    %16 = vector.broadcast %14 : vector<16x1xf32> to vector<16x384xf32>
    %17 = vector.broadcast %15 : vector<1x384xf32> to vector<16x384xf32>
    %18 = arith.mulf %16, %17 : vector<16x384xf32>
    %19 = arith.addf %13, %18 : vector<16x384xf32>
    %c0_4 = arith.constant 0 : index
    %c0_5 = arith.constant 0 : index
    %20 = vector.load %arg4[%c0_4, %c0_5] : memref<16x1xf32, #tpu.memory_space<vmem>>, vector<16x1xf32>
    %21 = vector.broadcast %20 : vector<16x1xf32> to vector<16x384xf32>
    %22 = arith.addf %19, %21 : vector<16x384xf32>
    %cst = arith.constant 2.000000e+00 : f32
    %23 = vector.broadcast %cst : f32 to vector<16x384xf32>
    %24 = arith.cmpf ogt, %22, %23 : vector<16x384xf32>
    %cst_6 = arith.constant 2.000000e-01 : f32
    %25 = vector.broadcast %cst_6 : f32 to vector<16x384xf32>
    %26 = arith.mulf %22, %25 : vector<16x384xf32>
    %27 = arith.select %24, %22, %26 : vector<16x384xi1>, vector<16x384xf32>
    %c0_7 = arith.constant 0 : index
    %c0_8 = arith.constant 0 : index
    %c0_9 = arith.constant 0 : index
    %28 = vector.load %arg5[%c0_7, %c0_8, %c0_9] : memref<1x16x384xf32, #tpu.memory_space<vmem>>, vector<1x16x384xf32>
    %29 = vector.shape_cast %28 : vector<1x16x384xf32> to vector<16x384xf32>
    %30 = vector.shape_cast %27 : vector<16x384xf32> to vector<1x16x384xf32>
    tpu.vector_store %arg5[%c0_7, %c0_8, %c0_9], %30 {strides = array<i32>} : memref<1x16x384xf32, #tpu.memory_space<vmem>>, vector<1x16x384xf32>,
    return
  }
  func.func @transform_0(%arg0: i32, %arg1: i32) -> (i32, i32, i32) {
    %c0_i32 = arith.constant 0 : i32
    %c0_i32_0 = arith.constant 0 : i32
    return %arg0, %c0_i32, %arg1 : i32, i32, i32
  }
  func.func @transform_1(%arg0: i32, %arg1: i32) -> (i32, i32) {
    %c0_i32 = arith.constant 0 : i32
    %c0_i32_0 = arith.constant 0 : i32
    %c0_i32_1 = arith.constant 0 : i32
    return %c0_i32, %c0_i32_0 : i32, i32
  }
  func.func @transform_2(%arg0: i32, %arg1: i32) -> (i32, i32) {
    %c0_i32 = arith.constant 0 : i32
    %c0_i32_0 = arith.constant 0 : i32
    %c0_i32_1 = arith.constant 0 : i32
    return %c0_i32, %c0_i32_0 : i32, i32
  }
  func.func @transform_3(%arg0: i32, %arg1: i32) -> (i32, i32, i32) {
    %c0_i32 = arith.constant 0 : i32
    %c0_i32_0 = arith.constant 0 : i32
    return %arg0, %c0_i32, %arg1 : i32, i32, i32
  }
}

</mosaic_0001>

<bundles_post_ra>
// kernel: model_forward.1
= control target key start
LH: loop header
LB: loop body
LE: loop exit
PB: predicated region body
PF: predicated region fallthrough
CT: control target
= control target key end

     0   :  { %s573_s12 = smov 0   ;;  %s575_s13 = smov 0   ;;  %s626_s0 = inlined_call_operand.vmem [shape: f32[2,3,384], index: 0, kind: input, shape index: {}]   ;;  %s627_s1 = inlined_call_operand.vmem [shape: f32[16,3], index: 1, kind: input, shape index: {}]   ;;  %s628_s2 = inlined_call_operand.vmem [shape: f32[16,1], index: 2, kind: input, shape index: {}]   ;;  %s629_s3 = inlined_call_operand.vmem [shape: f32[2,16,384], index: 3, kind: output, shape index: {}]  }
   0x1   :  { %s577_s14 = smov 0  }
   0x2 LB: > { %s25_s15 = sadd.s32 1, %s544_s13  ;;  %p486_p0 = scmp.ge.s32.totalorder %s548_s14, 1  ;;  %s548_s14 = sphi %s577_s14, %s13_s14   ;;  %s544_s13 = sphi %s575_s13, %s631_s13   ;;  %s540_s12 = sphi %s573_s12, %s630_s12  }
   0x3   : > { %p27_p1 = scmp.ge.s32.totalorder %s25_s15, 2  ;;  %p158_p2 = scmp.lt.s32.totalorder %s548_s14, 3 }
   0x5   : > { %s633_s15 = smov (%p27_p1, %s25_s15), 0  ;;  %p159_p3 = pnand %p486_p0, %p158_p2 }
   0x6   : > { %v212_v0 = vld [vmem:[%s627_s1] sm:$0xff] (!%p159_p3)  ;;  %v550_v1 = vmov (!%p159_p3), 1   ;;  %v551_v2 = vmov (!%p159_p3), 0   ;;  %v213_v3 = vld [vmem:[%s627_s1 + $0x8] sm:$0xff] (!%p159_p3)  ;;  %v552_v4 = vmov (!%p159_p3), 2   ;;  %p191_p4 = scmp.lt.s32.totalorder (!%p159_p3), %s540_s12, 1  ;;  %v226_v7 = vlaneseq (!%p159_p3) }
   0x7   : > { %162 = sbr.rel (%p159_p3) target bundleno = 159 (0x9f), region = 32  ;;  %521 = vset.pattern.permute.xlu1 (!%p159_p3), %v550_v1  ;;  %520 = vset.pattern.permute.xlu0 (!%p159_p3), %v551_v2  ;;  %v353_v5 = vld [vmem:[%s628_s2] sm:$0xff] (!%p159_p3)  ;;  %v354_v6 = vld [vmem:[%s628_s2 + $0x8] sm:$0xff] (!%p159_p3) }
   0x8   : > { %260 = vperm.xlu1 (!%p159_p3), %521, %v212_v0   ;;  %216 = vperm.xlu0 (!%p159_p3), %520, %v212_v0   ;;  %v227_v8 = vshrl.u32 (!%p159_p3), %v226_v7, 7 }
   0xa   : > { %v269_v9 = vsub.s32 (!%p159_p3), 1, %v227_v8  ;;  %v228_v10 = vsub.s32 (!%p159_p3), 0, %v227_v8  ;;  %v273_v12 = vsub.s32 (!%p159_p3), 5, %v227_v8  ;;  %v232_v13 = vsub.s32 (!%p159_p3), 4, %v227_v8 }
   0xb   : > { %v316_v17 = vsub.s32 (!%p159_p3), 2, %v227_v8  ;;  %v320_v18 = vsub.s32 (!%p159_p3), 6, %v227_v8 }
   0xc   : > { %264 = vperm.xlu1 (!%p159_p3), %521, %v213_v3   ;;  %221 = vperm.xlu0 (!%p159_p3), %520, %v213_v3  }
   0xe   : > { %s635_s12 = smov (!%p191_p4, %s540_s12), 1 }
   0xf   : > { %s491_s24 = smul.u32 12, %s635_s12 }
  0x10   : > { %523 = vset.pattern.permute.xlu1 %v552_v4  ;;  %522 = vset.pattern.permute.xlu0 %v552_v4  ;;  %s492_s28 = smul.u32 48, %s635_s12 }
  0x11   : > { %311 = vperm.xlu1 %523, %v213_v3   ;;  %307 = vperm.xlu0 %522, %v212_v0   ;;  %s198_s27 = scalar_lea.vmem %s626_s0, %s491_s24 }
  0x12   : > { %v210_v11 = vld [vmem:[%s198_s27] sm:$0x77]  ;;  %v211_v14 = vld [vmem:[%s198_s27 + $0x8] sm:$0x7]  ;;  %s208_s4 = scalar_lea.vmem %s629_s3, %s492_s28 }
  0x13   : > { %v270_v15 = vrot.slane %v210_v11, %v269_v9  ;;  %v229_v16 = vrot.slane %v210_v11, %v228_v10  ;;  %v274_v19 = vrot.slane %v210_v11, %v273_v12  ;;  %v278_v20 = vrot.slane %v211_v14, %v269_v9 }
  0x14   : > { %v233_v21 = vrot.slane %v210_v11, %v232_v13  ;;  %v237_v22 = vrot.slane %v211_v14, %v228_v10  ;;  %v317_v27 = vrot.slane %v210_v11, %v316_v17  ;;  %v321_v28 = vrot.slane %v210_v11, %v320_v18 }
  0x15   : > { %524 = vset.pattern.permute.xlu1 %v551_v2  ;;  %525 = vset.pattern.permute.xlu0 %v551_v2  ;;  %v285_v24 = vrot.slane %v270_v15, %v269_v9  ;;  %v244_v26 = vrot.slane %v229_v16, %v228_v10  ;;  %v325_v29 = vrot.slane %v211_v14, %v316_v17 }
  0x16   : > { %357 = vperm.xlu1 %524, %v353_v5   ;;  %362 = vperm.xlu0 %525, %v354_v6   ;;  %v289_v30 = vrot.slane %v274_v19, %v269_v9  ;;  %v293_v31 = vrot.slane %v278_v20, %v269_v9  ;;  %v248_v32 = vrot.slane %v233_v21, %v228_v10 }
  0x17   : > { %v252_v33 = vrot.slane %v237_v22, %v228_v10  ;;  %v332_v38 = vrot.slane %v317_v27, %v316_v17  ;;  %v336_v45 = vrot.slane %v321_v28, %v316_v17  ;;  %v340_v46 = vrot.slane %v325_v29, %v316_v17 }
  0x87   : > { %v261_v23 = vpop.permute.xlu1 %260  ;;  %v217_v25 = vpop.permute.xlu0 %216 }
  0x88   : > { %v294_v34 = vmul.f32 %v285_v24, %v261_v23  ;;  %v253_v35 = vmul.f32 %v244_v26, %v217_v25  ;;  %v295_v47 = vmul.f32 %v289_v30, %v261_v23  ;;  %v296_v48 = vmul.f32 %v293_v31, %v261_v23 }
  0x89   : > { %v254_v49 = vmul.f32 %v248_v32, %v217_v25  ;;  %v255_v50 = vmul.f32 %v252_v33, %v217_v25 }
  0x8a   : > { %v300_v51 = vadd.f32 %v294_v34, %v253_v35 }
  0x8b   : > { %v265_v36 = vpop.permute.xlu1 %264  ;;  %v222_v37 = vpop.permute.xlu0 %221  ;;  %v301_v61 = vadd.f32 %v295_v47, %v254_v49  ;;  %v302_v62 = vadd.f32 %v296_v48, %v255_v50 }
  0x8c   : > { %v297_v39 = vmul.f32 %v285_v24, %v265_v36  ;;  %v298_v40 = vmul.f32 %v289_v30, %v265_v36  ;;  %v299_v41 = vmul.f32 %v293_v31, %v265_v36  ;;  %v256_v42 = vmul.f32 %v244_v26, %v222_v37 }
  0x8d   : > { %v257_v43 = vmul.f32 %v248_v32, %v222_v37  ;;  %v258_v44 = vmul.f32 %v252_v33, %v222_v37 }
  0x8e   : > { %v303_v52 = vadd.f32 %v297_v39, %v256_v42 }
  0x8f   : > { %v304_v53 = vadd.f32 %v298_v40, %v257_v43  ;;  %v305_v54 = vadd.f32 %v299_v41, %v258_v44 }
  0x90   : > { %v312_v55 = vpop.permute.xlu1 %311  ;;  %v308_v56 = vpop.permute.xlu0 %307 }
  0x91   : > { %v344_v57 = vmul.f32 %v332_v38, %v312_v55  ;;  %v345_v58 = vmul.f32 %v336_v45, %v312_v55  ;;  %v346_v59 = vmul.f32 %v340_v46, %v312_v55  ;;  %v341_v60 = vmul.f32 %v332_v38, %v308_v56 }
  0x92   : > { %v342_v63 = vmul.f32 %v336_v45, %v308_v56  ;;  %v343_v0 = vmul.f32 %v340_v46, %v308_v56 }
  0x93   : > { %v347_v1 = vadd.f32 %v341_v60, %v300_v51  ;;  %v350_v2 = vadd.f32 %v344_v57, %v303_v52  ;;  %v351_v3 = vadd.f32 %v345_v58, %v304_v53  ;;  %v352_v4 = vadd.f32 %v346_v59, %v305_v54 }
  0x94   : > { %v348_v5 = vadd.f32 %v342_v63, %v301_v61  ;;  %v349_v6 = vadd.f32 %v343_v0, %v302_v62 }
  0x95   : > { %v358_v7 = vpop.permute.xlu1 %357  ;;  %v363_v8 = vpop.permute.xlu0 %362 }
  0x96   : > { %v365_v9 = vadd.f32 %v358_v7, %v347_v1  ;;  %v366_v10 = vadd.f32 %v358_v7, %v348_v5  ;;  %v367_v11 = vadd.f32 %v358_v7, %v349_v6  ;;  %v368_v12 = vadd.f32 %v363_v8, %v350_v2 }
  0x97   : > { %v369_v13 = vadd.f32 %v363_v8, %v351_v3  ;;  %v370_v14 = vadd.f32 %v363_v8, %v352_v4 }
  0x98   : > { %vm371_vm0 = vcmp.gt.f32.partialorder %v365_v9, 2.0  ;;  %vm372_vm1 = vcmp.gt.f32.partialorder %v366_v10, 2.0  ;;  %vm373_vm2 = vcmp.gt.f32.partialorder %v367_v11, 2.0  ;;  %v377_v15 = vmul.f32 0.2, %v365_v9 }
  0x99   : > { %v378_v16 = vmul.f32 0.2, %v366_v10  ;;  %v379_v17 = vmul.f32 0.2, %v367_v11  ;;  %vm374_vm3 = vcmp.gt.f32.partialorder %v368_v12, 2.0  ;;  %vm375_vm4 = vcmp.gt.f32.partialorder %v369_v13, 2.0 }
  0x9a   : > { %v383_v18 = vsel %vm371_vm0, %v365_v9, %v377_v15  ;;  %vm376_vm5 = vcmp.gt.f32.partialorder %v370_v14, 2.0  ;;  %v380_v19 = vmul.f32 0.2, %v368_v12  ;;  %v381_v20 = vmul.f32 0.2, %v369_v13 }
  0x9b   : > { %v384_v21 = vsel %vm372_vm1, %v366_v10, %v378_v16  ;;  %v385_v22 = vsel %vm373_vm2, %v367_v11, %v379_v17  ;;  %389 = vst [vmem:[%s208_s4] sm:$0xff] %v383_v18  ;;  %v382_v23 = vmul.f32 0.2, %v370_v14 }
  0x9c   : > { %390 = vst [vmem:[%s208_s4 + $0x8] sm:$0xff] %v384_v21  ;;  %391 = vst [vmem:[%s208_s4 + $0x10] sm:$0xff] %v385_v22  ;;  %v386_v24 = vsel %vm374_vm3, %v368_v12, %v380_v19  ;;  %v387_v25 = vsel %vm375_vm4, %v369_v13, %v381_v20 }
  0x9d   : > { %v388_v26 = vsel %vm376_vm5, %v370_v14, %v382_v23  ;;  %392 = vst [vmem:[%s208_s4 + $0x18] sm:$0xff] %v386_v24  ;;  %393 = vst [vmem:[%s208_s4 + $0x20] sm:$0xff] %v387_v25 }
  0x9e   : > { %394 = vst [vmem:[%s208_s4 + $0x28] sm:$0xff] %v388_v26 }
  0x9f PF: > { %s13_s14 = sadd.s32 1, %s548_s14   ;;  %s630_s12 = smov %s544_s13 }
  0xa0   : > { %p10_p5 = scmp.ge.s32.totalorder %s13_s14, 4   ;;  %s631_s13 = smov %s633_s15 }
  0xa2   :  { %12 = sbr.rel (!%p10_p5) target bundleno = 2 (0x2), region = 62 }

</bundles_post_ra>
